<compile_context>
chip_gen: v7x
topology: tpu7x:2x2x1
jax: 0.10.0
libtpu: 0.0.40
codegen_flags: <defaults>
</compile_context>

<pallas_src>
import jax
import jax.numpy as jnp
import numpy as np
from jax.experimental import pallas as pl
from jax.experimental.pallas import tpu as pltpu


def _round_up(x, m):
    return (x + m - 1) // m * m


def _make_apsdown_kernel(criterion, c_out_pad, tile_t, n_t, m0_thresh, m1_thresh):
    """Kernel for one (batch, time-tile) grid point.

    Inputs (VMEM refs):
      x4_ref : (4*C_in_pad, TT)         stacked [xe; xo; xo_prev; xe_next] tile
      w_ref  : (2*C_out_pad, 4*C_in_pad) fused conv taps
    Outputs:
      y0_ref, y1_ref : (C_out_pad, TT)  both polyphase components
      n0_ref, n1_ref : (1, 1) f32       phase norms accumulated over time tiles
    """
    if criterion == 'l2':
        def norm_fn(v):
            return jnp.sum(v * v, keepdims=True)
    elif criterion == 'l1':
        def norm_fn(v):
            return jnp.sum(jnp.abs(v), keepdims=True)
    else:
        raise ValueError('Unknown criterion choice')

    def kernel(x4_ref, w_ref, y0_ref, y1_ref, n0_ref, n1_ref):
        t = pl.program_id(1)

        # Single fused-tap matmul: [y0; y1] = W_fused @ [xe; xo; xo_prev; xe_next]
        y01 = jnp.dot(w_ref[...], x4_ref[...],
                      preferred_element_type=jnp.float32)
        y0 = y01[:c_out_pad]
        y1 = y01[c_out_pad:]

        @pl.when(t == 0)
        def _():
            n0_ref[...] = jnp.zeros_like(n0_ref)
            n1_ref[...] = jnp.zeros_like(n1_ref)

        # Interior tiles: no masking, plain store + norm accumulation.
        @pl.when(t != n_t - 1)
        def _():
            y0_ref[...] = y0.astype(y0_ref.dtype)
            y1_ref[...] = y1.astype(y1_ref.dtype)
            n0_ref[...] += norm_fn(y0)
            n1_ref[...] += norm_fn(y1)

        # Last tile: zero tile-padding lanes and the aps_pad column (odd T)
        # before both the store and the norm reduction.  Thresholds are
        # static Python ints relative to the last tile's start.
        @pl.when(t == n_t - 1)
        def _():
            lane = jax.lax.broadcasted_iota(jnp.int32, (1, tile_t), 1)
            y0m = y0 * (lane < m0_thresh).astype(jnp.float32)
            y1m = y1 * (lane < m1_thresh).astype(jnp.float32)
            y0_ref[...] = y0m.astype(y0_ref.dtype)
            y1_ref[...] = y1m.astype(y1_ref.dtype)
            n0_ref[...] += norm_fn(y0m)
            n1_ref[...] += norm_fn(y1m)

    return kernel


def aps_down_pallas(x, w, stride=2, apspool_criterion='l2', time_tile=1024,
                    matmul_dtype=None):
    """Equivalent of ApsDown.forward. Returns ((output, polyphase_indices), pad)."""
    if stride != 2:
        raise NotImplementedError('Only stride=2 is supported')
    assert time_tile % 128 == 0 and time_tile >= 128

    B, C_in, T = x.shape
    C_out, C_in_w, K = w.shape
    assert C_in_w == C_in and K == 3

    t_is_odd = (T % 2 != 0)
    pad = (0, 1) if t_is_odd else (0, 0)
    T_even = T + (T % 2)
    T_half = T_even // 2

    # Channel padding so matmul sublane dims are tile-aligned.
    C_in_pad = _round_up(C_in, 2)           # 4*C_in_pad is a multiple of 8 (f32)
    C_out_pad = _round_up(C_out, 8)

    # --- time tiling: lane-dense, multiple of 128, sized against a VMEM budget
    x4_item = np.dtype(matmul_dtype).itemsize if matmul_dtype is not None \
        else np.dtype(x.dtype).itemsize
    w_item = np.dtype(matmul_dtype).itemsize if matmul_dtype is not None \
        else np.dtype(w.dtype).itemsize
    y_item = np.dtype(x.dtype).itemsize

    def tile_vmem_bytes(tt):
        b_x4 = 4 * C_in_pad * tt * x4_item
        b_y = 2 * C_out_pad * tt * y_item
        b_w = 2 * C_out_pad * 4 * C_in_pad * w_item
        b_acc = 2 * C_out_pad * tt * 4          # f32 matmul result
        return 2 * (b_x4 + b_y + b_w) + b_acc   # double-buffered blocks

    VMEM_BUDGET = 24 * 1024 * 1024              # safe within v7x's 64 MiB VMEM
    TT = max(128, min(time_tile, _round_up(T_half, 128)))
    while TT > 128 and tile_vmem_bytes(TT) > VMEM_BUDGET:
        TT -= 128
    T_half_pad = _round_up(T_half, TT)
    n_t = T_half_pad // TT

    # --- layout plumbing (single pass over x; all shifts done here, no halos)
    x_p = jnp.pad(x, ((0, 0), (0, C_in_pad - C_in), (0, 2 * T_half_pad - T)))
    xe = x_p[:, :, 0::2]                                  # x[2j]
    xo = x_p[:, :, 1::2]                                  # x[2j+1]
    zcol = jnp.zeros((B, C_in_pad, 1), x_p.dtype)
    xo_prev = jnp.concatenate([zcol, xo[:, :, :-1]], axis=2)   # x[2j-1], 0 at j=0
    xe_next = jnp.concatenate([xe[:, :, 1:], zcol], axis=2)    # x[2j+2], 0 at end
    X4 = jnp.concatenate([xe, xo, xo_prev, xe_next], axis=1)   # (B, 4*C_in_pad, Tp)

    # Fused taps.  With xe=x[2j], xo=x[2j+1]:
    #   y0 = W1*xe + W2*xo + W0*xo_prev
    #   y1 = W0*xe + W1*xo + W2*xe_next
    w_p = jnp.pad(w, ((0, C_out_pad - C_out), (0, C_in_pad - C_in), (0, 0)))
    W0, W1, W2 = w_p[..., 0], w_p[..., 1], w_p[..., 2]
    Z = jnp.zeros_like(W0)
    W_fused = jnp.concatenate(
        [jnp.concatenate([W1, W2, W0, Z], axis=1),
         jnp.concatenate([W0, W1, Z, W2], axis=1)], axis=0)  # (2*C_out_pad, 4*C_in_pad)

    if matmul_dtype is not None:
        X4 = X4.astype(matmul_dtype)
        W_fused = W_fused.astype(matmul_dtype)

    # Static last-tile mask thresholds (relative to the last tile's start).
    last_start = (n_t - 1) * TT
    m0_thresh = T_half - last_start
    m1_thresh = (T_half - (1 if t_is_odd else 0)) - last_start

    kernel = _make_apsdown_kernel(apspool_criterion, C_out_pad, TT, n_t,
                                  m0_thresh, m1_thresh)

    vmem_limit = int(min(max(tile_vmem_bytes(TT) + 4 * 1024 * 1024,
                             16 * 1024 * 1024), 64 * 1024 * 1024))

    y0_all, y1_all, n0, n1 = pl.pallas_call(
        kernel,
        grid=(B, n_t),
        in_specs=[
            pl.BlockSpec((None, 4 * C_in_pad, TT), lambda b, t: (b, 0, t)),
            pl.BlockSpec((2 * C_out_pad, 4 * C_in_pad), lambda b, t: (0, 0)),
        ],
        out_specs=[
            pl.BlockSpec((None, C_out_pad, TT), lambda b, t: (b, 0, t)),
            pl.BlockSpec((None, C_out_pad, TT), lambda b, t: (b, 0, t)),
            pl.BlockSpec((None, 1, 1), lambda b, t: (b, 0, 0)),
            pl.BlockSpec((None, 1, 1), lambda b, t: (b, 0, 0)),
        ],
        out_shape=[
            jax.ShapeDtypeStruct((B, C_out_pad, T_half_pad), x.dtype),
            jax.ShapeDtypeStruct((B, C_out_pad, T_half_pad), x.dtype),
            jax.ShapeDtypeStruct((B, 1, 1), jnp.float32),
            jax.ShapeDtypeStruct((B, 1, 1), jnp.float32),
        ],
        compiler_params=pltpu.CompilerParams(
            dimension_semantics=("parallel", "arbitrary"),
            vmem_limit_bytes=vmem_limit),
    )(X4, W_fused)

    # Per-batch phase selection in the wrapper: direct select (no stack/gather).
    norms = jnp.concatenate([n0, n1], axis=1).reshape(B, 2)
    polyphase_indices = jnp.argmax(norms, axis=1).astype(jnp.int32)
    y0s = y0_all[:, :C_out, :T_half]
    y1s = y1_all[:, :C_out, :T_half]
    out = jnp.where((polyphase_indices == 0)[:, None, None], y0s, y1s)
    return (out, polyphase_indices), pad


def aps_down_reference(x, w, apspool_criterion='l2'):
    """Pure-JAX reference mirroring the PyTorch code (for verification)."""
    y = jax.lax.conv_general_dilated(
        x, w, window_strides=(1,), padding=((1, 1),),
        dimension_numbers=('NCH', 'OIH', 'NCH'))
    T = y.shape[-1]
    if T % 2 != 0:
        y = jnp.pad(y, ((0, 0), (0, 0), (0, 1)))
        pad = (0, 1)
    else:
        pad = (0, 0)
    y0 = y[:, :, 0::2]
    y1 = y[:, :, 1::2]
    comb = jnp.stack([y0, y1], axis=1)           # (B, 2, C, T_half)
    B = comb.shape[0]
    ordp = 2 if apspool_criterion == 'l2' else 1
    norms = jnp.linalg.norm(comb.reshape(B, 2, -1), ord=ordp, axis=-1)
    idx = jnp.argmax(norms, axis=1)
    out = comb[jnp.arange(B), idx]
    return (out, idx), pad


if __name__ == "__main__":
    key = jax.random.PRNGKey(0)

    def run_case(B, C_in, C_out, T, criterion, time_tile):
        kx, kw = jax.random.split(jax.random.fold_in(key, T * 131 + C_out))
        x = jax.random.normal(kx, (B, C_in, T), dtype=jnp.float32)
        # Deterministic Conv1d-style weight init: U(-1/sqrt(fan_in), ...)
        fan_in = C_in * 3
        bound = 1.0 / float(np.sqrt(fan_in))
        w = jax.random.uniform(kw, (C_out, C_in, 3), jnp.float32, -bound, bound)

        (out, idx), pad = aps_down_pallas(
            x, w, stride=2, apspool_criterion=criterion, time_tile=time_tile)
        jax.block_until_ready(out)
        jax.block_until_ready(idx)

        (out_r, idx_r), pad_r = aps_down_reference(x, w, criterion)
        np.testing.assert_allclose(np.asarray(out), np.asarray(out_r),
                                   rtol=1e-5, atol=1e-5)
        np.testing.assert_array_equal(np.asarray(idx), np.asarray(idx_r))
        assert pad == pad_r

    # Primary small case consistent with the module: B=2, C_in=4, C_out=8, T=16.
    run_case(2, 4, 8, 16, 'l2', 1024)
    # Odd time length (exercises the aps_pad zero column) and the l1 criterion.
    run_case(2, 4, 8, 15, 'l1', 1024)
    # Multi-time-tile case (exercises last-tile masking + norm accumulation).
    run_case(2, 4, 8, 300, 'l2', 128)
    # Odd channel counts (exercises C_in/C_out padding paths).
    run_case(3, 5, 7, 40, 'l2', 256)

    print("KERNEL_OK")
</pallas_src>

<mosaic_0001>
module attributes {stable_mosaic.version = 11 : i64} {
  func.func @kernel(%arg0: i32, %arg1: i32, %arg2: memref<1x16x128xf32, #tpu.memory_space<vmem>>, %arg3: memref<16x16xf32, #tpu.memory_space<vmem>>, %arg4: memref<1x8x128xf32, #tpu.memory_space<vmem>>, %arg5: memref<1x8x128xf32, #tpu.memory_space<vmem>>, %arg6: memref<1x1x1xf32, #tpu.memory_space<vmem>>, %arg7: memref<1x1x1xf32, #tpu.memory_space<vmem>>) attributes {dimension_semantics = [#tpu.dimension_semantics<parallel>, #tpu.dimension_semantics<arbitrary>], iteration_bounds = array<i64: 2, 1>, scalar_prefetch = 0 : i64, scratch_operands = 0 : i64, tpu.core_type = #tpu.core_type<tc>, window_params = [{transform_indices = @transform_0, window_bounds = array<i64: 1, 16, 128>}, {pipeline_mode = #tpu.pipeline_mode<synchronous>, transform_indices = @transform_1, window_bounds = array<i64: 16, 16>}, {transform_indices = @transform_2, window_bounds = array<i64: 1, 8, 128>}, {transform_indices = @transform_3, window_bounds = array<i64: 1, 8, 128>}, {transform_indices = @transform_4, window_bounds = array<i64: 1, 1, 1>}, {transform_indices = @transform_5, window_bounds = array<i64: 1, 1, 1>}]} {
    %c0 = arith.constant 0 : index
    %c0_0 = arith.constant 0 : index
    %0 = vector.load %arg3[%c0, %c0_0] : memref<16x16xf32, #tpu.memory_space<vmem>>, vector<16x16xf32>
    %c0_1 = arith.constant 0 : index
    %c0_2 = arith.constant 0 : index
    %c0_3 = arith.constant 0 : index
    %1 = vector.load %arg2[%c0_1, %c0_2, %c0_3] : memref<1x16x128xf32, #tpu.memory_space<vmem>>, vector<1x16x128xf32>
    %2 = vector.shape_cast %1 : vector<1x16x128xf32> to vector<16x128xf32>
    %cst = arith.constant dense<0.000000e+00> : vector<16x128xf32>
    %3 = tpu.matmul %0, %2, %cst {dimension_numbers = #tpu.dot_dimension_numbers<[1], [0], [0], [1], [0, 0, 1, 1], [], []>} : vector<16x16xf32>, vector<16x128xf32>, vector<16x128xf32> -> vector<16x128xf32>
    %4 = vector.extract_strided_slice %3 {offsets = [0, 0], sizes = [8, 128], strides = [1, 1]} : vector<16x128xf32> to vector<8x128xf32>
    %5 = vector.extract_strided_slice %3 {offsets = [8, 0], sizes = [8, 128], strides = [1, 1]} : vector<16x128xf32> to vector<8x128xf32>
    %c0_i32 = arith.constant 0 : i32
    %6 = arith.cmpi eq, %arg1, %c0_i32 : i32
    %7 = arith.extui %6 : i1 to i32
    %c0_i32_4 = arith.constant 0 : i32
    %8 = arith.cmpi ne, %7, %c0_i32_4 : i32
    scf.if %8 {
      %cst_9 = arith.constant 0.000000e+00 : f32
      %15 = vector.broadcast %cst_9 : f32 to vector<1x1xf32>
      %c0_10 = arith.constant 0 : index
      %c0_11 = arith.constant 0 : index
      %c0_12 = arith.constant 0 : index
      %16 = vector.load %arg6[%c0_10, %c0_11, %c0_12] : memref<1x1x1xf32, #tpu.memory_space<vmem>>, vector<1x1x1xf32>
      %17 = vector.shape_cast %16 : vector<1x1x1xf32> to vector<1x1xf32>
      %18 = vector.shape_cast %15 : vector<1x1xf32> to vector<1x1x1xf32>
      tpu.vector_store %arg6[%c0_10, %c0_11, %c0_12], %18 {strides = array<i32>} : memref<1x1x1xf32, #tpu.memory_space<vmem>>, vector<1x1x1xf32>,
      %cst_13 = arith.constant 0.000000e+00 : f32
      %19 = vector.broadcast %cst_13 : f32 to vector<1x1xf32>
      %c0_14 = arith.constant 0 : index
      %c0_15 = arith.constant 0 : index
      %c0_16 = arith.constant 0 : index
      %20 = vector.load %arg7[%c0_14, %c0_15, %c0_16] : memref<1x1x1xf32, #tpu.memory_space<vmem>>, vector<1x1x1xf32>
      %21 = vector.shape_cast %20 : vector<1x1x1xf32> to vector<1x1xf32>
      %22 = vector.shape_cast %19 : vector<1x1xf32> to vector<1x1x1xf32>
      tpu.vector_store %arg7[%c0_14, %c0_15, %c0_16], %22 {strides = array<i32>} : memref<1x1x1xf32, #tpu.memory_space<vmem>>, vector<1x1x1xf32>,
    } else {
    }
    %c0_i32_5 = arith.constant 0 : i32
    %9 = arith.cmpi ne, %arg1, %c0_i32_5 : i32
    %10 = arith.extui %9 : i1 to i32
    %c0_i32_6 = arith.constant 0 : i32
    %11 = arith.cmpi ne, %10, %c0_i32_6 : i32
    scf.if %11 {
      %c0_9 = arith.constant 0 : index
      %c0_10 = arith.constant 0 : index
      %c0_11 = arith.constant 0 : index
      %15 = vector.load %arg4[%c0_9, %c0_10, %c0_11] : memref<1x8x128xf32, #tpu.memory_space<vmem>>, vector<1x8x128xf32>
      %16 = vector.shape_cast %15 : vector<1x8x128xf32> to vector<8x128xf32>
      %17 = vector.shape_cast %4 : vector<8x128xf32> to vector<1x8x128xf32>
      tpu.vector_store %arg4[%c0_9, %c0_10, %c0_11], %17 {strides = array<i32>} : memref<1x8x128xf32, #tpu.memory_space<vmem>>, vector<1x8x128xf32>,
      %c0_12 = arith.constant 0 : index
      %c0_13 = arith.constant 0 : index
      %c0_14 = arith.constant 0 : index
      %18 = vector.load %arg5[%c0_12, %c0_13, %c0_14] : memref<1x8x128xf32, #tpu.memory_space<vmem>>, vector<1x8x128xf32>
      %19 = vector.shape_cast %18 : vector<1x8x128xf32> to vector<8x128xf32>
      %20 = vector.shape_cast %5 : vector<8x128xf32> to vector<1x8x128xf32>
      tpu.vector_store %arg5[%c0_12, %c0_13, %c0_14], %20 {strides = array<i32>} : memref<1x8x128xf32, #tpu.memory_space<vmem>>, vector<1x8x128xf32>,
      %c0_15 = arith.constant 0 : index
      %c0_16 = arith.constant 0 : index
      %c0_17 = arith.constant 0 : index
      %21 = vector.load %arg6[%c0_15, %c0_16, %c0_17] : memref<1x1x1xf32, #tpu.memory_space<vmem>>, vector<1x1x1xf32>
      %22 = vector.shape_cast %21 : vector<1x1x1xf32> to vector<1x1xf32>
      %23 = arith.mulf %4, %4 : vector<8x128xf32>
      %24 = vector.shape_cast %23 : vector<8x128xf32> to vector<1x8x128xf32>
      %cst_18 = arith.constant dense<0.000000e+00> : vector<1xf32>
      %25 = vector.multi_reduction <add>, %24, %cst_18 [1, 2] : vector<1x8x128xf32> to vector<1xf32>
      %26 = vector.shape_cast %25 : vector<1xf32> to vector<1x1x1xf32>
      %27 = vector.extract %26[0, 0, 0] : f32 from vector<1x1x1xf32>
      %28 = vector.broadcast %27 : f32 to vector<1x1xf32>
      %29 = arith.addf %22, %28 : vector<1x1xf32>
      %c0_19 = arith.constant 0 : index
      %c0_20 = arith.constant 0 : index
      %c0_21 = arith.constant 0 : index
      %30 = vector.load %arg6[%c0_19, %c0_20, %c0_21] : memref<1x1x1xf32, #tpu.memory_space<vmem>>, vector<1x1x1xf32>
      %31 = vector.shape_cast %30 : vector<1x1x1xf32> to vector<1x1xf32>
      %32 = vector.shape_cast %29 : vector<1x1xf32> to vector<1x1x1xf32>
      tpu.vector_store %arg6[%c0_19, %c0_20, %c0_21], %32 {strides = array<i32>} : memref<1x1x1xf32, #tpu.memory_space<vmem>>, vector<1x1x1xf32>,
      %c0_22 = arith.constant 0 : index
      %c0_23 = arith.constant 0 : index
      %c0_24 = arith.constant 0 : index
      %33 = vector.load %arg7[%c0_22, %c0_23, %c0_24] : memref<1x1x1xf32, #tpu.memory_space<vmem>>, vector<1x1x1xf32>
      %34 = vector.shape_cast %33 : vector<1x1x1xf32> to vector<1x1xf32>
      %35 = arith.mulf %5, %5 : vector<8x128xf32>
      %36 = vector.shape_cast %35 : vector<8x128xf32> to vector<1x8x128xf32>
      %cst_25 = arith.constant dense<0.000000e+00> : vector<1xf32>
      %37 = vector.multi_reduction <add>, %36, %cst_25 [1, 2] : vector<1x8x128xf32> to vector<1xf32>
      %38 = vector.shape_cast %37 : vector<1xf32> to vector<1x1x1xf32>
      %39 = vector.extract %38[0, 0, 0] : f32 from vector<1x1x1xf32>
      %40 = vector.broadcast %39 : f32 to vector<1x1xf32>
      %41 = arith.addf %34, %40 : vector<1x1xf32>
      %c0_26 = arith.constant 0 : index
      %c0_27 = arith.constant 0 : index
      %c0_28 = arith.constant 0 : index
      %42 = vector.load %arg7[%c0_26, %c0_27, %c0_28] : memref<1x1x1xf32, #tpu.memory_space<vmem>>, vector<1x1x1xf32>
      %43 = vector.shape_cast %42 : vector<1x1x1xf32> to vector<1x1xf32>
      %44 = vector.shape_cast %41 : vector<1x1xf32> to vector<1x1x1xf32>
      tpu.vector_store %arg7[%c0_26, %c0_27, %c0_28], %44 {strides = array<i32>} : memref<1x1x1xf32, #tpu.memory_space<vmem>>, vector<1x1x1xf32>,
    } else {
    }
    %c0_i32_7 = arith.constant 0 : i32
    %12 = arith.cmpi eq, %arg1, %c0_i32_7 : i32
    %13 = arith.extui %12 : i1 to i32
    %c0_i32_8 = arith.constant 0 : i32
    %14 = arith.cmpi ne, %13, %c0_i32_8 : i32
    scf.if %14 {
      %15 = tpu.iota {dimensions = array<i32: 1>} : vector<1x128xi32>
      %c8_i32 = arith.constant 8 : i32
      %16 = vector.broadcast %c8_i32 : i32 to vector<1x128xi32>
      %17 = arith.cmpi slt, %15, %16 : vector<1x128xi32>
      %18 = arith.extui %17 : vector<1x128xi1> to vector<1x128xi32>
      %19 = arith.sitofp %18 : vector<1x128xi32> to vector<1x128xf32>
      %20 = vector.broadcast %19 : vector<1x128xf32> to vector<8x128xf32>
      %21 = arith.mulf %4, %20 : vector<8x128xf32>
      %c8_i32_9 = arith.constant 8 : i32
      %22 = vector.broadcast %c8_i32_9 : i32 to vector<1x128xi32>
      %23 = arith.cmpi slt, %15, %22 : vector<1x128xi32>
      %24 = arith.extui %23 : vector<1x128xi1> to vector<1x128xi32>
      %25 = arith.sitofp %24 : vector<1x128xi32> to vector<1x128xf32>
      %26 = vector.broadcast %25 : vector<1x128xf32> to vector<8x128xf32>
      %27 = arith.mulf %5, %26 : vector<8x128xf32>
      %c0_10 = arith.constant 0 : index
      %c0_11 = arith.constant 0 : index
      %c0_12 = arith.constant 0 : index
      %28 = vector.load %arg4[%c0_10, %c0_11, %c0_12] : memref<1x8x128xf32, #tpu.memory_space<vmem>>, vector<1x8x128xf32>
      %29 = vector.shape_cast %28 : vector<1x8x128xf32> to vector<8x128xf32>
      %30 = vector.shape_cast %21 : vector<8x128xf32> to vector<1x8x128xf32>
      tpu.vector_store %arg4[%c0_10, %c0_11, %c0_12], %30 {strides = array<i32>} : memref<1x8x128xf32, #tpu.memory_space<vmem>>, vector<1x8x128xf32>,
      %c0_13 = arith.constant 0 : index
      %c0_14 = arith.constant 0 : index
      %c0_15 = arith.constant 0 : index
      %31 = vector.load %arg5[%c0_13, %c0_14, %c0_15] : memref<1x8x128xf32, #tpu.memory_space<vmem>>, vector<1x8x128xf32>
      %32 = vector.shape_cast %31 : vector<1x8x128xf32> to vector<8x128xf32>
      %33 = vector.shape_cast %27 : vector<8x128xf32> to vector<1x8x128xf32>
      tpu.vector_store %arg5[%c0_13, %c0_14, %c0_15], %33 {strides = array<i32>} : memref<1x8x128xf32, #tpu.memory_space<vmem>>, vector<1x8x128xf32>,
      %c0_16 = arith.constant 0 : index
      %c0_17 = arith.constant 0 : index
      %c0_18 = arith.constant 0 : index
      %34 = vector.load %arg6[%c0_16, %c0_17, %c0_18] : memref<1x1x1xf32, #tpu.memory_space<vmem>>, vector<1x1x1xf32>
      %35 = vector.shape_cast %34 : vector<1x1x1xf32> to vector<1x1xf32>
      %36 = arith.mulf %21, %21 : vector<8x128xf32>
      %37 = vector.shape_cast %36 : vector<8x128xf32> to vector<1x8x128xf32>
      %cst_19 = arith.constant dense<0.000000e+00> : vector<1xf32>
      %38 = vector.multi_reduction <add>, %37, %cst_19 [1, 2] : vector<1x8x128xf32> to vector<1xf32>
      %39 = vector.shape_cast %38 : vector<1xf32> to vector<1x1x1xf32>
      %40 = vector.extract %39[0, 0, 0] : f32 from vector<1x1x1xf32>
      %41 = vector.broadcast %40 : f32 to vector<1x1xf32>
      %42 = arith.addf %35, %41 : vector<1x1xf32>
      %c0_20 = arith.constant 0 : index
      %c0_21 = arith.constant 0 : index
      %c0_22 = arith.constant 0 : index
      %43 = vector.load %arg6[%c0_20, %c0_21, %c0_22] : memref<1x1x1xf32, #tpu.memory_space<vmem>>, vector<1x1x1xf32>
      %44 = vector.shape_cast %43 : vector<1x1x1xf32> to vector<1x1xf32>
      %45 = vector.shape_cast %42 : vector<1x1xf32> to vector<1x1x1xf32>
      tpu.vector_store %arg6[%c0_20, %c0_21, %c0_22], %45 {strides = array<i32>} : memref<1x1x1xf32, #tpu.memory_space<vmem>>, vector<1x1x1xf32>,
      %c0_23 = arith.constant 0 : index
      %c0_24 = arith.constant 0 : index
      %c0_25 = arith.constant 0 : index
      %46 = vector.load %arg7[%c0_23, %c0_24, %c0_25] : memref<1x1x1xf32, #tpu.memory_space<vmem>>, vector<1x1x1xf32>
      %47 = vector.shape_cast %46 : vector<1x1x1xf32> to vector<1x1xf32>
      %48 = arith.mulf %27, %27 : vector<8x128xf32>
      %49 = vector.shape_cast %48 : vector<8x128xf32> to vector<1x8x128xf32>
      %cst_26 = arith.constant dense<0.000000e+00> : vector<1xf32>
      %50 = vector.multi_reduction <add>, %49, %cst_26 [1, 2] : vector<1x8x128xf32> to vector<1xf32>
      %51 = vector.shape_cast %50 : vector<1xf32> to vector<1x1x1xf32>
      %52 = vector.extract %51[0, 0, 0] : f32 from vector<1x1x1xf32>
      %53 = vector.broadcast %52 : f32 to vector<1x1xf32>
      %54 = arith.addf %47, %53 : vector<1x1xf32>
      %c0_27 = arith.constant 0 : index
      %c0_28 = arith.constant 0 : index
      %c0_29 = arith.constant 0 : index
      %55 = vector.load %arg7[%c0_27, %c0_28, %c0_29] : memref<1x1x1xf32, #tpu.memory_space<vmem>>, vector<1x1x1xf32>
      %56 = vector.shape_cast %55 : vector<1x1x1xf32> to vector<1x1xf32>
      %57 = vector.shape_cast %54 : vector<1x1xf32> to vector<1x1x1xf32>
      tpu.vector_store %arg7[%c0_27, %c0_28, %c0_29], %57 {strides = array<i32>} : memref<1x1x1xf32, #tpu.memory_space<vmem>>, vector<1x1x1xf32>,
    } else {
    }
    return
  }
  func.func @transform_0(%arg0: i32, %arg1: i32) -> (i32, i32, i32) {
    %c0_i32 = arith.constant 0 : i32
    %c0_i32_0 = arith.constant 0 : i32
    return %arg0, %c0_i32, %arg1 : i32, i32, i32
  }
  func.func @transform_1(%arg0: i32, %arg1: i32) -> (i32, i32) {
    %c0_i32 = arith.constant 0 : i32
    %c0_i32_0 = arith.constant 0 : i32
    %c0_i32_1 = arith.constant 0 : i32
    return %c0_i32, %c0_i32_0 : i32, i32
  }
  func.func @transform_2(%arg0: i32, %arg1: i32) -> (i32, i32, i32) {
    %c0_i32 = arith.constant 0 : i32
    %c0_i32_0 = arith.constant 0 : i32
    return %arg0, %c0_i32, %arg1 : i32, i32, i32
  }
  func.func @transform_3(%arg0: i32, %arg1: i32) -> (i32, i32, i32) {
    %c0_i32 = arith.constant 0 : i32
    %c0_i32_0 = arith.constant 0 : i32
    return %arg0, %c0_i32, %arg1 : i32, i32, i32
  }
  func.func @transform_4(%arg0: i32, %arg1: i32) -> (i32, i32, i32) {
    %c0_i32 = arith.constant 0 : i32
    %c0_i32_0 = arith.constant 0 : i32
    %c0_i32_1 = arith.constant 0 : i32
    return %arg0, %c0_i32, %c0_i32_0 : i32, i32, i32
  }
  func.func @transform_5(%arg0: i32, %arg1: i32) -> (i32, i32, i32) {
    %c0_i32 = arith.constant 0 : i32
    %c0_i32_0 = arith.constant 0 : i32
    %c0_i32_1 = arith.constant 0 : i32
    return %arg0, %c0_i32, %c0_i32_0 : i32, i32, i32
  }
}

</mosaic_0001>

<bundles_post_ra>
// kernel: tpu_custom_call.1
= control target key start
LH: loop header
LB: loop body
LE: loop exit
PB: predicated region body
PF: predicated region fallthrough
CT: control target
= control target key end

     0   :  { %s1290_s0 = inlined_call_operand.hbm [shape: f32[2,16,128], index: 0, kind: input, shape index: {}]   ;;  %s1291_s1 = inlined_call_operand.hbm [shape: f32[16,16], index: 1, kind: input, shape index: {}]   ;;  %s1292_s2 = inlined_call_operand.hbm [shape: f32[2,8,128], index: 2, kind: output, shape index: {0}]   ;;  %s1293_s3 = inlined_call_operand.hbm [shape: f32[2,8,128], index: 3, kind: output, shape index: {1}]   ;;  %s1294_s4 = inlined_call_operand.vmem [shape: f32[2,1,1], index: 4, kind: output, shape index: {2}]   ;;  %s1295_s5 = inlined_call_operand.vmem [shape: f32[2,1,1], index: 5, kind: output, shape index: {3}]  }
   0x1   :  { %1302 = sst [smem:[#allocation14_spill]] %s1290_s0 }
   0x2   :  { %1303 = sst [smem:[#allocation15_spill]] %s1291_s1 }
   0x3   :  { %11 = vsyncpa [#allocation3], 0 }
   0x4   :  { %13 = vsyncpa [#allocation3 + $0x1], 0 }
   0x5   :  { %14 = vsyncpa [#allocation6], 0 }
   0x6   :  { %15 = vsyncpa [#allocation4], 0 }
   0x7   :  { %17 = vsyncpa [#allocation4 + $0x1], 0 }
   0x8   :  { %18 = vsyncpa [#allocation9], 0 }
   0x9   :  { %20 = vsyncpa [#allocation9 + $0x1], 0  ;;  %s1019_s18 = smov 0   ;;  %s1021_s19 = smov 0  }
   0xa   :  { %s1023_s20 = smov 0   ;;  %s1025_s21 = smov 0  }
   0xb   :  { %s1027_s22 = smov 0   ;;  %s1029_s23 = smov 0  }
   0xc LB: > { %s681_s24 = sadd.s32 4294967295, %s980_s23   ;;  %s682_s25 = sadd.s32 4294967294, %s980_s23   ;;  %s980_s23 = sphi %s1029_s23, %s26_s23   ;;  %s976_s22 = sphi %s1027_s22, %s1327_s22   ;;  %s972_s21 = sphi %s1025_s21, %s1326_s21   ;;  %s968_s20 = sphi %s1023_s20, %s1325_s20   ;;  %s964_s19 = sphi %s1021_s19, %s1324_s19   ;;  %s960_s18 = sphi %s1019_s18, %s1323_s18  }
   0xd   : > { %p60_p0 = scmp.ne.s32.totalorder %s964_s19, %s960_s18  ;;  %p1053_p1 = scmp.eq.s32.totalorder %s681_s24, 0 }
   0xe   : > { %p1057_p2 = scmp.eq.s32.totalorder %s681_s24, 1  ;;  %p113_p3 = scmp.eq.s32.totalorder %s682_s25, 1 }
   0xf   : > { %s1304_s26 = scalar_select %p1053_p1, 1, 0 }
  0x10   : > { %s1305_s27 = scalar_select %p1057_p2, 1, 0 }
  0x11   : > { %p1063_p4 = por %p1053_p1, %p60_p0  ;;  %p683_p5 = scmp.ge.s32.totalorder %s980_s23, 1 }
  0x12   : > { %p1068_p6 = por %p113_p3, %p60_p0  ;;  %p200_p7 = scmp.lt.s32.totalorder %s980_s23, 3 }
  0x13   : > { %s1306_s28 = scalar_select %p1063_p4, 1, 0 }
  0x14   : > { %s1307_s29 = scalar_select %p1068_p6, 1, 0 }
  0x15   : > { %p1073_p8 = pnand %p683_p5, %p200_p7  ;;  %s982_s6 = smov [#allocation5]  }
  0x16   : > { %s212_s7 = sshll.u32 %s982_s6, 4  ;;  %s38_s9 = sadd.s32 1, %s976_s22  ;;  %s213_s7 = int_to_ptr.vmem [resolvable:$true] %s212_s7 }
  0x17   : > { %s1308_s30 = scalar_select %p1073_p8, 1, 0 }
  0x18   : > { %p733_p9 = pneg %p1073_p8  ;;  %s1310_s1 = sld [smem:[#allocation15_spill]] }
  0x1a   : > { %p1082_p11 = pnand %p733_p9, %p1053_p1 }
  0x1c   : > { %p806_p13 = pneg %p1082_p11 }
  0x1e   : > { %s804_s12 = scalar_lea.hbm %s1310_s1, 256 }
  0x1f   : > { %p805_p12 = scmp.ne.s32.totalorder %s1310_s1, %s804_s12  ;;  %p811_p5 = scmp.lt.u32.totalorder %s804_s12, %s1310_s1 }
  0x21   : > { %p807_p0 = pnand %p806_p13, %p805_p12 }
  0x23   : > { %p808_p3 = pneg %p807_p0 }
  0x25   : > { %p813_p7 = pnand %p811_p5, %p808_p3 }
  0x27   : > { %816 = shalt.err (!%p813_p7)
}
  0x28   : > { %s817_s17 = scalar_lea.vmem %s213_s7, 256  ;;  %p825_p1 = scmp.lt.s32.totalorder %s213_s7, %s213_s7 }
  0x29   : > { %p818_p9 = scmp.ne.s32.totalorder %s213_s7, %s817_s17  ;;  %p826_p4 = scmp.lt.s32.totalorder %s817_s17, %s817_s17 }
  0x2b   : > { %p820_p10 = pnand %p818_p9, %p806_p13  ;;  %p827_p8 = por %p826_p4, %p825_p1 }
  0x2d   : > { %p821_p6 = pneg %p820_p10 }
  0x2f   : > { %p828_p2 = pnand %p827_p8, %p821_p6 }
  0x31   : > { %831 = shalt.err (!%p828_p2)
}
  0x32   : > { %s1300_s24 = smov 128   ;;  %s984_s25 = smov 8  }
  0x33   : > { %736 = dma.hbm_to_vmem [thread:$0]  (!%p1082_p11), %s1310_s1, 256, %s213_s7, [#allocation6], %s1300_s24, %s1300_s24, %s984_s25  }
  0x34   : > { %p40_p1 = scmp.ge.s32.totalorder %s38_s9, 2  ;;  %s47_s11 = sadd.s32 1, %s968_s20 }
  0x35   : > { %p54_p2 = scmp.ne.s32.totalorder %s968_s20, %s964_s19  ;;  %p55_p4 = scmp.eq.s32.totalorder %s980_s23, 0 }
  0x36   : > { %s1329_s9 = smov (%p40_p1, %s38_s9), 0  ;;  %p1312_p8 = scmp.ne.s32.totalorder %s1305_s27, 0 }
  0x37   : > { %p1112_p6 = por %p55_p4, %p54_p2  ;;  %s42_s13 = ssub.s32 %s976_s22, %s1329_s9 }
  0x38   : > { %p1118_p10 = por %p1312_p8, %p54_p2  ;;  %p749_p12 = scmp.lt.s32.totalorder %s980_s23, 2 }
  0x39   : > { %p45_p11 = scmp.eq.s32.totalorder %s42_s13, 0  ;;  %s226_s7 = sand.u32 1, %s968_s20  }
  0x3a   : > { %s686_s14 = sshll.u32 %s226_s7, 4  ;;  %s703_s16 = sshll.u32 %s976_s22, 8 }
  0x3b   : > { %s1127_s15 = scalar_select %p45_p11, %s968_s20, %s47_s11  }
  0x3c   : > { %s1314_s0 = sld [smem:[#allocation14_spill]]  ;;  %s230_s27 = scalar_lea.vmem [#allocation2], %s686_s14 }
  0x3d   : > { %s238_s24 = sshll.u32 %s230_s27, 4  ;;  %p1139_p13 = pnand %p749_p12, %p1112_p6  ;;  %s1135_s24 = int_to_ptr.vmem [resolvable:$true] %s238_s24 }
  0x3e   : > { %s1143_s11 = scalar_lea.sflag [#allocation3], %s226_s7 }
  0x3f   : > { %p834_p3 = pneg %p1139_p13 }
  0x42   : > { %s1133_s10 = scalar_lea.hbm %s1314_s0, %s703_s16  ;;  %s837_s12 = scalar_lea.hbm %s1314_s0, 512 }
  0x43   : > { %s832_s17 = scalar_lea.hbm %s1133_s10, 256  ;;  %p838_p9 = scmp.lt.u32.totalorder %s1133_s10, %s1314_s0 }
  0x44   : > { %p833_p0 = scmp.ne.s32.totalorder %s1133_s10, %s832_s17  ;;  %p839_p1 = scmp.lt.u32.totalorder %s837_s12, %s832_s17 }
  0x45   : > { %p841_p4 = scmp.lt.u32.totalorder %s832_s17, %s1133_s10 }
  0x46   : > { %p835_p5 = pnand %p834_p3, %p833_p0  ;;  %p840_p2 = por %p839_p1, %p838_p9 }
  0x48   : > { %p836_p7 = pneg %p835_p5  ;;  %p842_p6 = por %p841_p4, %p840_p2 }
  0x4a   : > { %p843_p8 = pnand %p842_p6, %p836_p7 }
  0x4c   : > { %846 = shalt.err (!%p843_p8)
}
  0x4d   : > { %s847_s7 = scalar_lea.vmem %s1135_s24, 256  ;;  %s985_s14 = smov [#allocation2]  }
  0x4e   : > { %p848_p12 = scmp.ne.s32.totalorder %s1135_s24, %s847_s7  ;;  %s852_s16 = sshll.u32 %s985_s14, 4  ;;  %s853_s16 = int_to_ptr.vmem [resolvable:$false] %s852_s16 }
  0x4f   : > { %s854_s6 = scalar_lea.vmem %s853_s16, 512  ;;  %p855_p5 = scmp.lt.s32.totalorder %s1135_s24, %s853_s16 }
  0x50   : > { %p850_p11 = pnand %p848_p12, %p834_p3  ;;  %p856_p9 = scmp.lt.s32.totalorder %s854_s6, %s847_s7 }
  0x52   : > { %p851_p0 = pneg %p850_p11  ;;  %p857_p1 = por %p856_p9, %p855_p5 }
  0x54   : > { %p858_p2 = pnand %p857_p1, %p851_p0 }
  0x56   : > { %861 = shalt.err (!%p858_p2)
}
  0x57   : > { %s1316_s17 = smov 128   ;;  %p1317_p3 = scmp.ne.s32.totalorder %s1308_s30, 0 }
  0x58   : > { %740 = dma.hbm_to_vmem [thread:$0]  (!%p1139_p13), %s1133_s10, 256, %s1135_s24, %s1143_s11, %s1316_s17, %s1316_s17, %s984_s25  }
  0x59   : > { %250 = sbr.rel (%p1317_p3) target bundleno = 536 (0x218), region = 28  ;;  %s1177_s12 = sand.u32 (!%p1317_p3), 1, %s964_s19  }
  0x5a   : > { %s690_s27 = sshll.u32 (!%p1317_p3), %s1177_s12, 4  ;;  %s253_s7 = scalar_lea.sflag (!%p1317_p3), [#allocation3], %s1177_s12 }
  0x5b   : > { %s256_s14 = scalar_lea.vmem (!%p1317_p3), [#allocation2], %s690_s27  ;;  %p1318_p7 = scmp.ne.s32.totalorder (!%p1317_p3), %s1306_s28, 0 }
  0x60   : > { %943 = dma.done.wait (%p1318_p7), %s253_s7, 256  }
  0x61   : > { %945 = vsyncadd (%p1318_p7), %s253_s7, 4294967040  ;;  %p1319_p4 = scmp.ne.s32.totalorder %s1304_s26, 0 }
  0x63   : > { %947 = dma.done.wait (%p1319_p4), [#allocation6], 256  }
  0x64   : > { %949 = vsyncadd (%p1319_p4), [#allocation6], 4294967040  ;;  %vm308_vm0 = vcmask 130048   ;;  %v306_v0 = vld [vmem:[%s256_s14] sm:$0xff]  ;;  %v307_v1 = vld [vmem:[%s256_s14 + $0x8] sm:$0xff]  ;;  %v435_v5 = vlaneseq  ;;  %s692_s28 = sshll.u32 %s1177_s12, 3 }
  0x65   : > { %v304_v2 = vld [vmem:[#allocation5] sm:$0xff]  ;;  %v715_v3 = vpack.c.bf16 %v307_v1, %v306_v0  ;;  %v305_v4 = vld [vmem:[#allocation5 + $0x8] sm:$0xff]  ;;  %v986_v7 = vmov 0.0   ;;  %s1190_s26 = scalar_lea.vmem [#allocation8], %s692_s28  ;;  %s280_s30 = scalar_lea.vmem [#allocation7], %s692_s28  ;;  %vm394_vm2 = vcmask 0  }
  0x66   : > { %712 = vmatprep.mubr.msk.f32.mxu0 %vm308_vm0, %v304_v2  ;;  %v436_v6 = vand.u32 127, %v435_v5  ;;  %p298_p13 = scmp.lt.s32.totalorder %s972_s21, 1  ;;  %s1301_s17 = sshll.u32 %s972_s21, 7 }
  0x67   : > { %716 = vmatprep.subr.bf16.mxu0 %v715_v3  ;;  %s499_s27 = sshll.u32 %s280_s30, 4  ;;  %s1215_s28 = scalar_lea.hbm %s1292_s2, %s1301_s17  ;;  %s500_s27 = int_to_ptr.vmem [resolvable:$true] %s499_s27 }
  0x68   : > { %718 = vmatpush3.bf16.msra.mxu0 %v715_v3  ;;  %vm437_vm1 = vcmp.lt.s32.totalorder %v436_v6, 8  ;;  %s299_s24 = scalar_select %p298_p13, %s972_s21, 1 }
  0x69   : > { %v696_v8 = vsel %vm437_vm1, 1.0, %v986_v7  ;;  %s474_s25 = scalar_lea.sflag [#allocation4], %s1177_s12  ;;  %s862_s10 = scalar_lea.vmem %s500_s27, 128 }
  0x6a   : > { %s1198_s13 = scalar_lea.vmem %s1294_s4, %s299_s24  ;;  %s1205_s6 = scalar_lea.vmem %s1295_s5, %s299_s24 }
  0x6b   : > { %713 = vmatmul.mubr.msk.f32.vlgmr.msra.gmra.mrb[0].mxu0 %vm308_vm0, %v305_v4  ;;  %395 = vst.msk [vmem:[%s1198_s13] sm:$0x1] %vm394_vm2, %v986_v7  ;;  %396 = vst.msk [vmem:[%s1205_s6] sm:$0x1] %vm394_vm2, %v986_v7  ;;  %p863_p6 = scmp.ne.s32.totalorder %s500_s27, %s862_s10  ;;  %s987_s24 = smov [#allocation7]  }
  0x6c   : > { %s866_s11 = sshll.u32 %s987_s24, 4  ;;  %s867_s11 = int_to_ptr.vmem [resolvable:$false] %s866_s11 }
  0x6d   : > { %p864_p8 = pnand %p863_p6, %p1118_p10  ;;  %s868_s16 = scalar_lea.vmem %s867_s11, 256 }
  0x6e   : > { %p869_p11 = scmp.lt.s32.totalorder %s500_s27, %s867_s11  ;;  %p870_p0 = scmp.lt.s32.totalorder %s868_s16, %s862_s10 }
  0x6f   : > { %p865_p12 = pneg %p864_p8 }
  0x70   : > { %p871_p5 = por %p870_p0, %p869_p11 }
  0x72   : > { %p872_p9 = pnand %p871_p5, %p865_p12 }
 0x13e   : > { %v714_v9 = vpop.f32.mrb[0].mxu0 }
 0x13f   : > { %v441_v10 = vmul.f32 %v714_v9, %v696_v8  ;;  %v381_v11 = vpop.f32.mrb[1].mxu0 }
 0x140   : > { %v440_v12 = vmul.f32 %v696_v8, %v381_v11 }
 0x141   : > { %443 = vst [vmem:[%s1190_s26] sm:$0xff] %v441_v10  ;;  %v460_v14 = vmul.f32 %v441_v10, %v441_v10 }
 0x142   : > { %442 = vst [vmem:[%s280_s30] sm:$0xff] %v440_v12  ;;  %v445_v13 = vmul.f32 %v440_v12, %v440_v12 }
 0x144   : > { %446 = vadd.xlane.f32.xlu0 %v445_v13 }
 0x148   : > { %461 = vadd.xlane.f32.xlu0 %v460_v14 }
 0x149   : > { %875 = shalt.err (!%p872_p9)
}
 0x14a   : > { %s876_s30 = scalar_lea.hbm %s1215_s28, 128  ;;  %s880_s24 = scalar_lea.hbm %s1292_s2, 256 }
 0x14b   : > { %p877_p1 = scmp.ne.s32.totalorder %s1215_s28, %s876_s30  ;;  %p881_p7 = scmp.lt.u32.totalorder %s1215_s28, %s1292_s2 }
 0x14c   : > { %p882_p4 = scmp.lt.u32.totalorder %s880_s24, %s876_s30  ;;  %p884_p6 = scmp.lt.u32.totalorder %s876_s30, %s1215_s28 }
 0x14d   : > { %p878_p2 = pnand %p877_p1, %p1118_p10 }
 0x14e   : > { %p883_p13 = por %p882_p4, %p881_p7 }
 0x14f   : > { %p879_p3 = pneg %p878_p2 }
 0x150   : > { %p885_p8 = por %p884_p6, %p883_p13 }
 0x152   : > { %p886_p12 = pnand %p885_p8, %p879_p3 }
 0x154   : > { %889 = shalt.err (!%p886_p12)
}
 0x155   : > { %729 = dma.vmem_to_hbm [thread:$0]  (%p1118_p10), %s500_s27, 128, %s1215_s28, %s474_s25  }
 0x156   : > { %s1320_s10 = sshll.u32 %s972_s21, 7  ;;  %s513_s14 = sshll.u32 %s1190_s26, 4  ;;  %s514_s14 = int_to_ptr.vmem [resolvable:$true] %s513_s14 }
 0x157   : > { %s1240_s17 = scalar_lea.hbm %s1293_s3, %s1320_s10  ;;  %s479_s30 = scalar_lea.sflag [#allocation9], %s1177_s12 }
 0x158   : > { %s890_s24 = scalar_lea.vmem %s514_s14, 128  ;;  %s988_s11 = smov [#allocation8]  }
 0x159   : > { %p891_p11 = scmp.ne.s32.totalorder %s514_s14, %s890_s24  ;;  %s894_s0 = sshll.u32 %s988_s11, 4  ;;  %s895_s0 = int_to_ptr.vmem [resolvable:$false] %s894_s0 }
 0x15a   : > { %s896_s1 = scalar_lea.vmem %s895_s0, 256  ;;  %p897_p9 = scmp.lt.s32.totalorder %s514_s14, %s895_s0 }
 0x15b   : > { %p892_p0 = pnand %p891_p11, %p1118_p10  ;;  %p898_p1 = scmp.lt.s32.totalorder %s896_s1, %s890_s24 }
 0x15d   : > { %p893_p5 = pneg %p892_p0  ;;  %p899_p2 = por %p898_p1, %p897_p9 }
 0x15f   : > { %p900_p3 = pnand %p899_p2, %p893_p5 }
 0x161   : > { %903 = shalt.err (!%p900_p3)
}
 0x162   : > { %s904_s21 = scalar_lea.hbm %s1240_s17, 128  ;;  %s908_s27 = scalar_lea.hbm %s1293_s3, 256 }
 0x163   : > { %p905_p7 = scmp.ne.s32.totalorder %s1240_s17, %s904_s21  ;;  %p909_p6 = scmp.lt.u32.totalorder %s1240_s17, %s1293_s3 }
 0x164   : > { %p910_p8 = scmp.lt.u32.totalorder %s908_s27, %s904_s21  ;;  %p912_p11 = scmp.lt.u32.totalorder %s904_s21, %s1240_s17 }
 0x165   : > { %p906_p4 = pnand %p905_p7, %p1118_p10 }
 0x166   : > { %p911_p12 = por %p910_p8, %p909_p6 }
 0x167   : > { %p907_p13 = pneg %p906_p4 }
 0x168   : > { %p913_p0 = por %p912_p11, %p911_p12 }
 0x16a   : > { %p914_p5 = pnand %p913_p0, %p907_p13 }
 0x16c   : > { %917 = shalt.err (!%p914_p5)
}
 0x16d   : > { %730 = dma.vmem_to_hbm [thread:$0]  (%p1118_p10), %s514_s14, 128, %s1240_s17, %s479_s30   ;;  %v444_v29 = vld [vmem:[%s1198_s13] sm:$0x1] }
 0x16e   : > { %v459_v32 = vld [vmem:[%s1205_s6] sm:$0x1] }
 0x1d1   : > { %v447_v15 = vpop.xlane.xlu0 %446 }
 0x1d2   : > { %v448_v16 = vrot.slane %v447_v15, 4 }
 0x1d4   : > { %v449_v17 = vadd.f32 %v448_v16, %v447_v15 }
 0x1d5   : > { %v462_v18 = vpop.xlane.xlu0 %461 }
 0x1d6   : > { %v450_v19 = vrot.slane %v449_v17, 2  ;;  %v463_v20 = vrot.slane %v462_v18, 4 }
 0x1d8   : > { %v464_v21 = vadd.f32 %v463_v20, %v462_v18  ;;  %v451_v22 = vadd.f32 %v450_v19, %v449_v17 }
 0x1da   : > { %v465_v23 = vrot.slane %v464_v21, 2  ;;  %v452_v24 = vrot.slane %v451_v22, 1 }
 0x1dc   : > { %v466_v25 = vadd.f32 %v465_v23, %v464_v21  ;;  %v453_v26 = vadd.f32 %v452_v24, %v451_v22 }
 0x1de   : > { %719 = vpush %v453_v26  ;;  %v467_v27 = vrot.slane %v466_v25, 1 }
 0x1e0   : > { %v468_v28 = vadd.f32 %v467_v27, %v466_v25 }
 0x1e2   : > { %721 = vpush %v468_v28 }
 0x20f   : > { %s720_s1 = spop %719 }
 0x210   : > { %v455_v30 = vstv %s720_s1 }
 0x211   : > { %v456_v31 = vadd.f32 %v455_v30, %v444_v29 }
 0x213   : > { %458 = vst.msk [vmem:[%s1198_s13] sm:$0x1] %vm394_vm2, %v456_v31  ;;  %s722_s8 = spop %721 }
 0x214   : > { %v470_v33 = vstv %s722_s8 }
 0x215   : > { %v471_v34 = vadd.f32 %v470_v33, %v459_v32 }
 0x217   : > { %472 = vst.msk [vmem:[%s1205_s6] sm:$0x1] %vm394_vm2, %v471_v34 }
 0x218 PF: > { %s531_s25 = sand.u32 1, %s960_s18   ;;  %p1321_p10 = scmp.ne.s32.totalorder %s1307_s29, 0 }
 0x219   : > { %p1322_p9 = scmp.ge.s32.totalorder %s980_s23, 2  ;;  %s532_s10 = scalar_lea.sflag [#allocation4], %s531_s25 }
 0x21b   : > { %p742_p1 = pnand %p1322_p9, %p1321_p10 }
 0x21d   : > { %951 = dma.done.wait (!%p742_p1), %s532_s10, 128  }
 0x21e   : > { %953 = vsyncadd (!%p742_p1), %s532_s10, 4294967168  ;;  %s541_s16 = scalar_lea.sflag [#allocation9], %s531_s25 }
 0x21f   : > { %955 = dma.done.wait (!%p742_p1), %s541_s16, 128  }
 0x220   : > { %957 = vsyncadd (!%p742_p1), %s541_s16, 4294967168  ;;  %s26_s23 = sadd.s32 1, %s980_s23   ;;  %s1323_s18 = smov %s964_s19 }
 0x221   : > { %p23_p2 = scmp.ge.s32.totalorder %s26_s23, 4   ;;  %s1324_s19 = smov %s968_s20 }
 0x222   : > { %s1325_s20 = smov %s1127_s15  ;;  %s1326_s21 = smov %s976_s22 }
 0x223   : > { %s1327_s22 = smov %s1329_s9  ;;  %25 = sbr.rel (!%p23_p2) target bundleno = 12 (0xc), region = 130 }
 0x22a   :  { %558 = vsyncpa [#allocation3], 1 }
 0x22b   :  { %560 = vsyncpa [#allocation3 + $0x1], 1 }
 0x22c   :  { %561 = vsyncpa [#allocation6], 1 }
 0x22d   :  { %562 = vsyncpa [#allocation4], 1 }
 0x22e   :  { %564 = vsyncpa [#allocation4 + $0x1], 1 }
 0x22f   :  { %565 = vsyncpa [#allocation9], 1 }
 0x230   :  { %567 = vsyncpa [#allocation9 + $0x1], 1 }

</bundles_post_ra>
